<compile_context>
chip_gen: v6e
topology: v6e:2x2x1
jax: 0.10.0
libtpu: 0.0.40
codegen_flags: <defaults>
</compile_context>

<pallas_src>
import functools

import jax
import jax.numpy as jnp
import numpy as np
from jax import lax
from jax.experimental import pallas as pl
from jax.experimental.pallas import tpu as pltpu

_VMEM_LIMIT = 32 << 20  # safe on v5e/v6e (128 MiB phys) and v7x (64 MiB phys)


# ----------------------------------------------------------------------------
# helpers
# ----------------------------------------------------------------------------
def _cdiv(a: int, b: int) -> int:
    return -(-a // b)


def _round_up(a: int, b: int) -> int:
    return (a + b - 1) // b * b


def _target_block_bytes() -> int:
    """Generation-aware per-block budget (sized in f32 bytes)."""
    try:
        kind = jax.devices()[0].device_kind.lower()
    except Exception:
        return 2 << 20
    if ("v5e" in kind) or ("v5 lite" in kind) or ("v5litepod" in kind):
        return 2 << 20          # v5e: stay well below the 16 MiB scoped default
    return 4 << 20              # v6e / v7x: bigger blocks amortize per-step overhead


def _sublane_multiple(dtype) -> int:
    # 8 for 4-byte, 16 for 2-byte, 32 for 1-byte dtypes (packed sublanes).
    return max(8, 32 // max(jnp.dtype(dtype).itemsize, 1))


def _tile_2d(rows: int, cols: int, dtype, target_bytes: int):
    """(row_tile, col_tile): col tile multiple of 128, row tile multiple of pack."""
    rmult = _sublane_multiple(dtype)
    elem = 4  # size by f32 (output / accumulation dtype) -> conservative
    cpad = _round_up(max(cols, 1), 128)
    tc_cap = max(128, (target_bytes // (rmult * elem)) // 128 * 128)
    tc = min(cpad, tc_cap)
    tr = max(rmult, (target_bytes // (tc * elem)) // rmult * rmult)
    tr = min(tr, _round_up(max(rows, 1), rmult))
    return tr, tc


def _as_2d(x):
    if x.ndim == 0:
        return x.reshape(1, 1)
    if x.ndim == 1:
        return x.reshape(1, -1)
    if x.ndim == 2:
        return x
    return x.reshape(-1, x.shape[-1])


# ----------------------------------------------------------------------------
# kernels
# ----------------------------------------------------------------------------
def _reduce_kernel(xpos_ref, sum_ref, ssq_ref, *, rows, cols, tr, tc, rb_per_core):
    """Accumulate masked sum / sum-of-squares of x_positive into (1, 8, tc) partials."""
    core = pl.program_id(0)
    r = pl.program_id(1)
    c = pl.program_id(2)

    @pl.when(jnp.logical_and(r == 0, c == 0))
    def _():
        sum_ref[...] = jnp.zeros_like(sum_ref)
        ssq_ref[...] = jnp.zeros_like(ssq_ref)

    row0 = (core * rb_per_core + r) * tr     # UNclamped offset (index_map clamps the DMA)
    col0 = c * tc

    @pl.when(row0 < rows)                    # skip duplicated (fully out-of-range) blocks
    def _():
        xp = xpos_ref[...].astype(jnp.float32)                       # (tr, tc)
        rid = lax.broadcasted_iota(jnp.int32, (tr, 1), 0) + row0
        cid = lax.broadcasted_iota(jnp.int32, (1, tc), 1) + col0
        xp = jnp.where((rid < rows) & (cid < cols), xp, jnp.float32(0.0))
        xg = xp.reshape(tr // 8, 8, tc)                              # free row-group view
        sum_ref[...] += jnp.sum(xg, axis=0)[None]
        ssq_ref[...] += jnp.sum(xg * xg, axis=0)[None]


def _conf_kernel(scal_ref, x_ref, conf_ref):
    """conf = exp(coef * max(x - mean, 0)^2); equals 1.0 where x <= mean."""
    mean = scal_ref[0]          # SMEM scalar (prefetched)
    coef = scal_ref[1]          # -0.5 / (std * std_factor)^2
    x = x_ref[...].astype(jnp.float32)
    d = jnp.maximum(x - mean, jnp.float32(0.0))
    conf_ref[...] = jnp.exp(coef * (d * d))


# ----------------------------------------------------------------------------
# pallas_call wrappers
# ----------------------------------------------------------------------------
def _conf_pass(scal, x, target_bytes):
    orig_shape = x.shape
    x2 = _as_2d(x)
    B, N = x2.shape
    TB, TN = _tile_2d(B, N, x2.dtype, target_bytes)
    nbr, nbc = _cdiv(B, TB), _cdiv(N, TN)

    conf = pl.pallas_call(
        _conf_kernel,
        out_shape=jax.ShapeDtypeStruct((B, N), jnp.float32),
        grid_spec=pltpu.PrefetchScalarGridSpec(
            num_scalar_prefetch=1,
            grid=(nbr, nbc),
            in_specs=[pl.BlockSpec((TB, TN), lambda i, j, s: (i, j))],
            out_specs=pl.BlockSpec((TB, TN), lambda i, j, s: (i, j)),
        ),
        compiler_params=pltpu.CompilerParams(
            dimension_semantics=("parallel", "parallel"),
            vmem_limit_bytes=_VMEM_LIMIT),
    )(scal, x2)
    return conf.reshape(orig_shape)


@functools.partial(jax.jit, static_argnames=("std_factor",))
def confidence_update(stats, x, x_positive, std_factor):
    """stats: (3,) f32 = [running_n, running_sum, running_sum_of_squares]."""
    target = _target_block_bytes()
    xpos_numel = x_positive.size            # static

    # ---- stage 1: masked tiled reduction over x_positive (no padding) ------
    xp = x_positive
    if xp.ndim != 2:
        flat = xp.reshape(-1)
        if flat.shape[0] > 0 and flat.shape[0] % 128 == 0:
            xp = flat.reshape(-1, 128)      # free bitcast, lane-dense
        else:
            xp = flat.reshape(1, -1)
    Rp, Cp = xp.shape
    TRp, TCp = _tile_2d(Rp, Cp, xp.dtype, target)
    n_rb = _cdiv(Rp, TRp)
    n_cb = _cdiv(Cp, TCp)
    n_cores = 2 if n_rb >= 2 else 1         # v7x: shard reduction across both TCs
    rb_pc = _cdiv(n_rb, n_cores)

    reduce_kernel = functools.partial(
        _reduce_kernel, rows=Rp, cols=Cp, tr=TRp, tc=TCp, rb_per_core=rb_pc)

    sums, ssqs = pl.pallas_call(
        reduce_kernel,
        out_shape=(jax.ShapeDtypeStruct((n_cores, 8, TCp), jnp.float32),
                   jax.ShapeDtypeStruct((n_cores, 8, TCp), jnp.float32)),
        grid=(n_cores, rb_pc, n_cb),
        in_specs=[pl.BlockSpec(
            (TRp, TCp),
            lambda core, r, c: (jnp.minimum(core * rb_pc + r, n_rb - 1), c))],
        out_specs=(pl.BlockSpec((1, 8, TCp), lambda core, r, c: (core, 0, 0)),
                   pl.BlockSpec((1, 8, TCp), lambda core, r, c: (core, 0, 0))),
        compiler_params=pltpu.CompilerParams(
            dimension_semantics=("parallel", "arbitrary", "arbitrary"),
            vmem_limit_bytes=_VMEM_LIMIT),
    )(xp)

    # ---- tiny scalar running-stat update (needed for returned mean/std anyway)
    psum = jnp.sum(sums, dtype=jnp.float32)
    pssq = jnp.sum(ssqs, dtype=jnp.float32)
    new_n = stats[0] + jnp.float32(xpos_numel)
    new_s = stats[1] + psum
    new_sq = stats[2] + pssq
    mean = new_s / new_n
    var = jnp.maximum(new_sq / new_n - mean * mean, jnp.float32(0.0))
    std = jnp.sqrt(var)
    denom = jnp.maximum(std * jnp.float32(std_factor), jnp.float32(1e-12))
    coef = jnp.float32(-0.5) / (denom * denom)
    scal = jnp.stack([mean, coef]).astype(jnp.float32)   # (2,) -> SMEM prefetch

    # ---- stage 2: tiled, pipelined elementwise confidence over x -----------
    conf = _conf_pass(scal, x, target)

    new_stats = jnp.stack([new_n, new_s, new_sq])
    return conf, new_stats, mean, std


@functools.partial(jax.jit, static_argnames=("std_factor",))
def confidence_inference(x, mean, std, std_factor):
    mean_s = jnp.asarray(mean, jnp.float32).reshape(-1)[0]
    std_s = jnp.asarray(std, jnp.float32).reshape(-1)[0]
    denom = jnp.maximum(std_s * jnp.float32(std_factor), jnp.float32(1e-12))
    coef = jnp.float32(-0.5) / (denom * denom)
    scal = jnp.stack([mean_s, coef]).astype(jnp.float32)
    return _conf_pass(scal, x, _target_block_bytes())


class ConfidenceGeneratorPallas:
    """JAX/Pallas port of base_wvn ConfidenceGenerator (method='running_mean')."""

    def __init__(self, std_factor: float = 0.5):
        self.std_factor = float(std_factor)
        self.stats = jnp.zeros((3,), jnp.float32)   # [n, sum, sum_of_squares]
        self.mean = jnp.zeros((1,), jnp.float32)
        self.var = jnp.ones((1,), jnp.float32)
        self.std = jnp.ones((1,), jnp.float32)

    def reset(self):
        self.stats = jnp.zeros((3,), jnp.float32)

    def update(self, x, x_positive):
        conf, new_stats, mean, std = confidence_update(
            self.stats, x, x_positive, self.std_factor)
        self.stats = new_stats
        self.mean = mean.reshape(1)
        self.std = std.reshape(1)
        self.var = (std * std).reshape(1)
        return conf

    def inference_without_update(self, x):
        return confidence_inference(x, self.mean, self.std, self.std_factor)

    def get_dict(self):
        return {"mean": self.mean, "var": self.var, "std": self.std}

    # forward(x) in the PyTorch module delegates to update(); the original signature
    # is missing x_positive, so we expose update(x, x_positive) directly.
    __call__ = update


# ----------------------------------------------------------------------------
# reference + self-test
# ----------------------------------------------------------------------------
def _reference(stats, x, x_positive, std_factor):
    n = stats[0] + x_positive.size
    s = stats[1] + np.float64(x_positive).sum()
    sq = stats[2] + (np.float64(x_positive) ** 2).sum()
    mean = s / n
    var = sq / n - mean ** 2
    std = np.sqrt(max(var, 0.0))
    conf = np.exp(-0.5 * ((np.float64(x) - mean) / (std * std_factor)) ** 2)
    conf = np.where(np.float64(x) < mean, 1.0, conf)
    return conf.astype(np.float32), np.array([n, s, sq], np.float64)


if __name__ == "__main__":
    key = jax.random.PRNGKey(0)
    k1, k2, k3, k4 = jax.random.split(key, 4)

    gen = ConfidenceGeneratorPallas(std_factor=0.5)

    # tile-aligned shapes
    x = jnp.abs(jax.random.normal(k1, (8, 256), jnp.float32))
    x_positive = jnp.abs(jax.random.normal(k2, (8, 128), jnp.float32)) * 0.5

    conf1 = jax.block_until_ready(gen.update(x, x_positive))
    ref1, stats1 = _reference(np.zeros(3, np.float64), np.asarray(x),
                              np.asarray(x_positive), 0.5)
    np.testing.assert_allclose(np.asarray(conf1), ref1, rtol=1e-4, atol=1e-5)

    # second update exercises the running-stat carry
    conf2 = jax.block_until_ready(gen.update(x, x_positive))
    ref2, stats2 = _reference(stats1, np.asarray(x), np.asarray(x_positive), 0.5)
    np.testing.assert_allclose(np.asarray(conf2), ref2, rtol=1e-4, atol=1e-5)

    # ragged, non-tile-aligned shapes exercise the no-padding masking paths
    xr = jnp.abs(jax.random.normal(k3, (5, 200), jnp.float32))
    xpr = jnp.abs(jax.random.normal(k4, (3, 70), jnp.float32)) * 0.5
    conf3 = jax.block_until_ready(gen.update(xr, xpr))
    ref3, _ = _reference(stats2, np.asarray(xr), np.asarray(xpr), 0.5)
    np.testing.assert_allclose(np.asarray(conf3), ref3, rtol=1e-4, atol=1e-5)

    # inference_without_update reuses the same elementwise kernel
    conf_inf = jax.block_until_ready(gen.inference_without_update(xr))
    np.testing.assert_allclose(np.asarray(conf_inf), ref3, rtol=1e-4, atol=1e-5)

    print("KERNEL_OK")
</pallas_src>

<mosaic_0001>
module attributes {stable_mosaic.version = 11 : i64} {
  func.func @_reduce_kernel(%arg0: i32, %arg1: i32, %arg2: i32, %arg3: memref<8x128xf32, #tpu.memory_space<vmem>>, %arg4: memref<1x8x128xf32, #tpu.memory_space<vmem>>, %arg5: memref<1x8x128xf32, #tpu.memory_space<vmem>>) attributes {dimension_semantics = [#tpu.dimension_semantics<parallel>, #tpu.dimension_semantics<arbitrary>, #tpu.dimension_semantics<arbitrary>], iteration_bounds = array<i64: 1, 1, 1>, scalar_prefetch = 0 : i64, scratch_operands = 0 : i64, tpu.core_type = #tpu.core_type<tc>, window_params = [{transform_indices = @transform_0, window_bounds = array<i64: 8, 128>}, {transform_indices = @transform_1, window_bounds = array<i64: 1, 8, 128>}, {transform_indices = @transform_2, window_bounds = array<i64: 1, 8, 128>}]} {
    %c0_i32 = arith.constant 0 : i32
    %0 = arith.cmpi eq, %arg1, %c0_i32 : i32
    %c0_i32_0 = arith.constant 0 : i32
    %1 = arith.cmpi eq, %arg2, %c0_i32_0 : i32
    %2 = arith.andi %0, %1 : i1
    %3 = arith.extui %2 : i1 to i32
    %c0_i32_1 = arith.constant 0 : i32
    %4 = arith.cmpi ne, %3, %c0_i32_1 : i32
    scf.if %4 {
      %cst = arith.constant 0.000000e+00 : f32
      %12 = vector.broadcast %cst : f32 to vector<1x8x128xf32>
      %c0 = arith.constant 0 : index
      %c0_4 = arith.constant 0 : index
      %c0_5 = arith.constant 0 : index
      %13 = vector.load %arg4[%c0, %c0_4, %c0_5] : memref<1x8x128xf32, #tpu.memory_space<vmem>>, vector<1x8x128xf32>
      tpu.vector_store %arg4[%c0, %c0_4, %c0_5], %12 {strides = array<i32>} : memref<1x8x128xf32, #tpu.memory_space<vmem>>, vector<1x8x128xf32>,
      %cst_6 = arith.constant 0.000000e+00 : f32
      %14 = vector.broadcast %cst_6 : f32 to vector<1x8x128xf32>
      %c0_7 = arith.constant 0 : index
      %c0_8 = arith.constant 0 : index
      %c0_9 = arith.constant 0 : index
      %15 = vector.load %arg5[%c0_7, %c0_8, %c0_9] : memref<1x8x128xf32, #tpu.memory_space<vmem>>, vector<1x8x128xf32>
      tpu.vector_store %arg5[%c0_7, %c0_8, %c0_9], %14 {strides = array<i32>} : memref<1x8x128xf32, #tpu.memory_space<vmem>>, vector<1x8x128xf32>,
    } else {
    }
    %c1_i32 = arith.constant 1 : i32
    %5 = arith.muli %arg0, %c1_i32 : i32
    %6 = arith.addi %5, %arg1 : i32
    %c8_i32 = arith.constant 8 : i32
    %7 = arith.muli %6, %c8_i32 : i32
    %c128_i32 = arith.constant 128 : i32
    %8 = arith.muli %arg2, %c128_i32 : i32
    %c8_i32_2 = arith.constant 8 : i32
    %9 = arith.cmpi slt, %7, %c8_i32_2 : i32
    %10 = arith.extui %9 : i1 to i32
    %c0_i32_3 = arith.constant 0 : i32
    %11 = arith.cmpi ne, %10, %c0_i32_3 : i32
    scf.if %11 {
      %c0 = arith.constant 0 : index
      %c0_4 = arith.constant 0 : index
      %12 = vector.load %arg3[%c0, %c0_4] : memref<8x128xf32, #tpu.memory_space<vmem>>, vector<8x128xf32>
      %13 = tpu.iota {dimensions = array<i32: 0>} : vector<8x1xi32>
      %14 = vector.broadcast %7 : i32 to vector<8x1xi32>
      %15 = arith.addi %13, %14 : vector<8x1xi32>
      %16 = tpu.iota {dimensions = array<i32: 1>} : vector<1x128xi32>
      %17 = vector.broadcast %8 : i32 to vector<1x128xi32>
      %18 = arith.addi %16, %17 : vector<1x128xi32>
      %c8_i32_5 = arith.constant 8 : i32
      %19 = vector.broadcast %c8_i32_5 : i32 to vector<8x1xi32>
      %20 = arith.cmpi slt, %15, %19 : vector<8x1xi32>
      %c128_i32_6 = arith.constant 128 : i32
      %21 = vector.broadcast %c128_i32_6 : i32 to vector<1x128xi32>
      %22 = arith.cmpi slt, %18, %21 : vector<1x128xi32>
      %23 = vector.broadcast %20 : vector<8x1xi1> to vector<8x128xi1>
      %24 = vector.broadcast %22 : vector<1x128xi1> to vector<8x128xi1>
      %25 = arith.andi %23, %24 : vector<8x128xi1>
      %cst = arith.constant 0.000000e+00 : f32
      %26 = vector.broadcast %cst : f32 to vector<8x128xf32>
      %27 = arith.select %25, %12, %26 : vector<8x128xi1>, vector<8x128xf32>
      %28 = vector.shape_cast %27 : vector<8x128xf32> to vector<1x8x128xf32>
      %c0_7 = arith.constant 0 : index
      %c0_8 = arith.constant 0 : index
      %c0_9 = arith.constant 0 : index
      %29 = vector.load %arg4[%c0_7, %c0_8, %c0_9] : memref<1x8x128xf32, #tpu.memory_space<vmem>>, vector<1x8x128xf32>
      %cst_10 = arith.constant dense<0.000000e+00> : vector<8x128xf32>
      %30 = vector.multi_reduction <add>, %28, %cst_10 [0] : vector<1x8x128xf32> to vector<8x128xf32>
      %31 = vector.shape_cast %30 : vector<8x128xf32> to vector<1x8x128xf32>
      %32 = arith.addf %29, %31 : vector<1x8x128xf32>
      %c0_11 = arith.constant 0 : index
      %c0_12 = arith.constant 0 : index
      %c0_13 = arith.constant 0 : index
      %33 = vector.load %arg4[%c0_11, %c0_12, %c0_13] : memref<1x8x128xf32, #tpu.memory_space<vmem>>, vector<1x8x128xf32>
      tpu.vector_store %arg4[%c0_11, %c0_12, %c0_13], %32 {strides = array<i32>} : memref<1x8x128xf32, #tpu.memory_space<vmem>>, vector<1x8x128xf32>,
      %c0_14 = arith.constant 0 : index
      %c0_15 = arith.constant 0 : index
      %c0_16 = arith.constant 0 : index
      %34 = vector.load %arg5[%c0_14, %c0_15, %c0_16] : memref<1x8x128xf32, #tpu.memory_space<vmem>>, vector<1x8x128xf32>
      %35 = arith.mulf %28, %28 : vector<1x8x128xf32>
      %cst_17 = arith.constant dense<0.000000e+00> : vector<8x128xf32>
      %36 = vector.multi_reduction <add>, %35, %cst_17 [0] : vector<1x8x128xf32> to vector<8x128xf32>
      %37 = vector.shape_cast %36 : vector<8x128xf32> to vector<1x8x128xf32>
      %38 = arith.addf %34, %37 : vector<1x8x128xf32>
      %c0_18 = arith.constant 0 : index
      %c0_19 = arith.constant 0 : index
      %c0_20 = arith.constant 0 : index
      %39 = vector.load %arg5[%c0_18, %c0_19, %c0_20] : memref<1x8x128xf32, #tpu.memory_space<vmem>>, vector<1x8x128xf32>
      tpu.vector_store %arg5[%c0_18, %c0_19, %c0_20], %38 {strides = array<i32>} : memref<1x8x128xf32, #tpu.memory_space<vmem>>, vector<1x8x128xf32>,
    } else {
    }
    return
  }
  func.func @transform_0(%arg0: i32, %arg1: i32, %arg2: i32) -> (i32, i32) {
    %c1_i32 = arith.constant 1 : i32
    %0 = arith.muli %arg0, %c1_i32 : i32
    %1 = arith.addi %0, %arg1 : i32
    %c0_i32 = arith.constant 0 : i32
    %2 = arith.minsi %1, %c0_i32 : i32
    %c0_i32_0 = arith.constant 0 : i32
    return %2, %arg2 : i32, i32
  }
  func.func @transform_1(%arg0: i32, %arg1: i32, %arg2: i32) -> (i32, i32, i32) {
    %c0_i32 = arith.constant 0 : i32
    %c0_i32_0 = arith.constant 0 : i32
    %c0_i32_1 = arith.constant 0 : i32
    return %arg0, %c0_i32, %c0_i32_0 : i32, i32, i32
  }
  func.func @transform_2(%arg0: i32, %arg1: i32, %arg2: i32) -> (i32, i32, i32) {
    %c0_i32 = arith.constant 0 : i32
    %c0_i32_0 = arith.constant 0 : i32
    %c0_i32_1 = arith.constant 0 : i32
    return %arg0, %c0_i32, %c0_i32_0 : i32, i32, i32
  }
}

module attributes {stable_mosaic.version = 11 : i64} {
  func.func @_conf_kernel(%arg0: i32, %arg1: i32, %arg2: memref<2xf32, #tpu.memory_space<smem>>, %arg3: memref<8x256xf32, #tpu.memory_space<vmem>>, %arg4: memref<8x256xf32, #tpu.memory_space<vmem>>) attributes {dimension_semantics = [#tpu.dimension_semantics<parallel>, #tpu.dimension_semantics<parallel>], iteration_bounds = array<i64: 1, 1>, scalar_prefetch = 1 : i64, scratch_operands = 0 : i64, tpu.core_type = #tpu.core_type<tc>, window_params = [{transform_indices = @transform_0, window_bounds = array<i64: 8, 256>}, {transform_indices = @transform_1, window_bounds = array<i64: 8, 256>}]} {
    %c0 = arith.constant 0 : index
    %0 = memref.load %arg2[%c0] : memref<2xf32, #tpu.memory_space<smem>>
    %c1 = arith.constant 1 : index
    %1 = memref.load %arg2[%c1] : memref<2xf32, #tpu.memory_space<smem>>
    %c0_0 = arith.constant 0 : index
    %c0_1 = arith.constant 0 : index
    %2 = vector.load %arg3[%c0_0, %c0_1] : memref<8x256xf32, #tpu.memory_space<vmem>>, vector<8x256xf32>
    %3 = vector.broadcast %0 : f32 to vector<8x256xf32>
    %4 = arith.subf %2, %3 : vector<8x256xf32>
    %cst = arith.constant 0.000000e+00 : f32
    %5 = vector.broadcast %cst : f32 to vector<8x256xf32>
    %6 = arith.maximumf %4, %5 : vector<8x256xf32>
    %7 = arith.mulf %6, %6 : vector<8x256xf32>
    %8 = vector.broadcast %1 : f32 to vector<8x256xf32>
    %9 = arith.mulf %8, %7 : vector<8x256xf32>
    %10 = math.exp %9 : vector<8x256xf32>
    %c0_2 = arith.constant 0 : index
    %c0_3 = arith.constant 0 : index
    %11 = vector.load %arg4[%c0_2, %c0_3] : memref<8x256xf32, #tpu.memory_space<vmem>>, vector<8x256xf32>
    tpu.vector_store %arg4[%c0_2, %c0_3], %10 {strides = array<i32>} : memref<8x256xf32, #tpu.memory_space<vmem>>, vector<8x256xf32>,
    return
  }
  func.func @transform_0(%arg0: i32, %arg1: i32, %arg2: memref<2xf32, #tpu.memory_space<smem>>) -> (i32, i32) {
    %c0_i32 = arith.constant 0 : i32
    return %arg0, %arg1 : i32, i32
  }
  func.func @transform_1(%arg0: i32, %arg1: i32, %arg2: memref<2xf32, #tpu.memory_space<smem>>) -> (i32, i32) {
    %c0_i32 = arith.constant 0 : i32
    return %arg0, %arg1 : i32, i32
  }
}

</mosaic_0001>

<bundles_post_ra>
// kernel: confidence_update.3
= control target key start
LH: loop header
LB: loop body
LE: loop exit
PB: predicated region body
PF: predicated region fallthrough
CT: control target
= control target key end

     0   :  { %s122_s0 = inlined_call_operand.vmem [shape: f32[2], index: 0, kind: input, shape index: {}]   ;;  %s123_s1 = inlined_call_operand.vmem [shape: f32[8,256], index: 1, kind: input, shape index: {}]   ;;  %s124_s2 = inlined_call_operand.hbm [shape: f32[8,256], index: 2, kind: output, shape index: {}]  }
   0x1   :  { %s7_s11 = sshll.u32 %s122_s0, 4  ;;  %s8_s11 = int_to_ptr.vmem [resolvable:$true] %s7_s11 }
   0x2   :  { %s57_s12 = scalar_lea.vmem %s8_s11, 16  ;;  %p62_p1 = scmp.lt.s32.totalorder %s8_s11, %s8_s11 }
   0x3   :  { %p58_p0 = scmp.ne.s32.totalorder %s8_s11, %s57_s12  ;;  %p63_p2 = scmp.lt.s32.totalorder %s57_s12, %s57_s12 }
   0x5   :  { %p64_p3 = por %p63_p2, %p62_p1 }
   0x7   :  { %p65_p4 = pnand %p64_p3, %p58_p0 }
   0x9   :  { %68 = shalt.err (!%p65_p4)  }
   0xa   :  { %s93_s13 = smov [#allocation3]  }
   0xb   :  { %10 = dma.vmem_to_smem %s8_s11, 16, %s93_s13, [#allocation2] }
   0xc   :  { %89 = dma.done.wait [#allocation2], 16 }
   0xd   :  { %90 = vsyncadd [#allocation2], 4294967280 }
   0xe   :  { %12 = sfence }
   0xf   :  { %s16_s14 = sld [smem:[#allocation3]] }
  0x10   :  { %13 = vsyncpa [#allocation5], 0  ;;  %s50_s15 = sld [smem:[#allocation3 + $0x1]]  ;;  %v18_v0 = vld [vmem:[%s123_s1] sm:$0xff]  ;;  %v19_v1 = vld [vmem:[%s123_s1 + $0x8] sm:$0xff]  ;;  %s94_s19 = smov [#allocation4]  }
  0x11   :  { %s42_s20 = sshll.u32 %s94_s19, 4  ;;  %s43_s20 = int_to_ptr.vmem [resolvable:$true] %s42_s20 }
  0x12   :  { %s69_s1 = scalar_lea.vmem %s43_s20, 256  ;;  %p74_p6 = scmp.lt.s32.totalorder %s43_s20, %s43_s20 }
  0x13   :  { %p70_p5 = scmp.ne.s32.totalorder %s43_s20, %s69_s1  ;;  %p75_p7 = scmp.lt.s32.totalorder %s69_s1, %s69_s1 }
  0x15   :  { %v20_v2 = vstv %s16_s14  ;;  %p76_p8 = por %p75_p7, %p74_p6 }
  0x16   :  { %v21_v3 = vsub.f32 %v18_v0, %v20_v2  ;;  %v22_v4 = vsub.f32 %v19_v1, %v20_v2  ;;  %v27_v7 = vstv %s50_s15 }
  0x17   :  { %p77_p9 = pnand %p76_p8, %p70_p5 }
  0x18   :  { %v23_v5 = vmax.f32 %v21_v3, 0.0  ;;  %v24_v6 = vmax.f32 %v22_v4, 0.0 }
  0x1a   :  { %v25_v8 = vmul.f32 %v23_v5, %v23_v5  ;;  %v26_v9 = vmul.f32 %v24_v6, %v24_v6 }
  0x1c   :  { %v28_v10 = vmul.f32 %v27_v7, %v25_v8  ;;  %v29_v11 = vmul.f32 %v27_v7, %v26_v9 }
  0x1e   :  { %v30_v12 = vmul.f32 1.442695, %v28_v10  ;;  %v32_v13 = vmul.f32 1.442695, %v29_v11 }
  0x20   :  { %53 = vpow2.f32 %v30_v12 }
  0x21   :  { %55 = vpow2.f32 %v32_v13 }
  0x2d   :  { %v54_v14 = vpop.eup %53 }
  0x2e   :  { %v56_v15 = vpop.eup %55  ;;  %34 = vst [vmem:[#allocation4] sm:$0xff] %v54_v14 }
  0x2f   :  { %35 = vst [vmem:[#allocation4 + $0x8] sm:$0xff] %v56_v15 }
  0x30   :  { %80 = shalt.err (!%p77_p9)
}
  0x31   :  { %45 = dma.vmem_to_hbm [thread:$0]  %s43_s20, 256, %s124_s2, [#allocation5]  }
  0x32   :  { %91 = dma.done.wait [#allocation5], 256  }
  0x33   :  { %92 = vsyncadd [#allocation5], 4294967040 }
  0x34   :  { %49 = vsyncpa [#allocation5], 1 }

// kernel: confidence_update.2
= control target key start
LH: loop header
LB: loop body
LE: loop exit
PB: predicated region body
PF: predicated region fallthrough
CT: control target
= control target key end

     0   :  { %s117_s0 = inlined_call_operand.vmem [shape: f32[8,128], index: 0, kind: input, shape index: {}]   ;;  %s118_s1 = inlined_call_operand.vmem [shape: f32[1,8,128], index: 1, kind: output, shape index: {0}]   ;;  %s119_s2 = inlined_call_operand.vmem [shape: f32[1,8,128], index: 2, kind: output, shape index: {1}]  }
   0x1   :  { %v52_v0 = vld [vmem:[%s117_s0] sm:$0xff] }
   0x2   :  { %v74_v1 = vmul.f32 %v52_v0, %v52_v0  ;;  %72 = vst [vmem:[%s118_s1] sm:$0xff] %v52_v0 }
   0x4   :  { %77 = vst [vmem:[%s119_s2] sm:$0xff] %v74_v1 }

</bundles_post_ra>
